<compile_context>
chip_gen: v6e
topology: v6e:2x2x1
jax: 0.10.0
libtpu: 0.0.40
codegen_flags: <defaults>
</compile_context>

<pallas_src>
import jax
import jax.numpy as jnp
from jax.experimental import pallas as pl
from jax.experimental.pallas import tpu as pltpu

_LANE_CANDIDATES = (2048, 1024, 512, 256, 128)


def _scale_shift_kernel(w_ref, b_ref, x_ref, o_ref):
    # w_ref / b_ref: (1,) f32 scalars in SMEM; x_ref / o_ref: (tile_rows, lanes)
    # VMEM tiles. Explicit cast keeps mixed precision (bf16 x, f32 params) legal.
    o_ref[...] = (x_ref[...] * w_ref[0] + b_ref[0]).astype(o_ref.dtype)


def _generation_config():
    """(tile_byte_budget, vmem_limit_bytes_or_None, want_two_grid_steps)."""
    try:
        kind = jax.devices()[0].device_kind.lower()
    except Exception:
        kind = ""
    if "v7" in kind or "tpu7" in kind:
        # 3.2 TB/s HBM per TC: bigger tiles amortize per-grid-step overhead.
        # 8 MiB tile -> 32 MiB double-buffered in+out, fits 64 MiB VMEM with headroom.
        return 8 << 20, 40 << 20, True
    if "v6" in kind:
        return 4 << 20, 32 << 20, False
    # v5e and anything else: 2 MiB tile -> 8 MiB footprint, under the 16 MiB
    # scoped-VMEM default, so no explicit limit needed.
    return 2 << 20, None, False


def _pick_lanes(total):
    """Largest lane width (multiple of 128) that exactly divides `total`."""
    for lanes in _LANE_CANDIDATES:
        if total % lanes == 0:
            return lanes
    return None


def mctct_layer_norm(hidden_states, singleton_weight, singleton_bias):
    """MCTCTLayerNorm forward: hidden_states * singleton_weight + singleton_bias."""
    # TODO(synk): in production this 1-FLOP-per-8-bytes op should be fused into its
    # producer/consumer kernel; standalone it pays a full HBM read+write regardless.
    orig_shape = hidden_states.shape
    dtype = hidden_states.dtype
    total = hidden_states.size
    if total == 0:
        return hidden_states

    # Params are (1,) f32 in the PyTorch module; keep them f32 in SMEM and compute
    # in f32 (exact for f32 activations, >= bf16 precision for bf16 activations).
    w = singleton_weight.reshape(1).astype(jnp.float32)
    b = singleton_bias.reshape(1).astype(jnp.float32)

    itemsize = jnp.dtype(dtype).itemsize
    flat = hidden_states.reshape(total)

    lanes = _pick_lanes(total)
    padded_total = total
    if lanes is None:
        # Rare fallback (total not a multiple of 128): pad only to the next
        # multiple of 128 lanes. TODO(synk): this pad + trailing slice each cost
        # one extra HBM pass; avoided entirely on the common lane-friendly shapes.
        lanes = 128
        padded_total = pl.cdiv(total, lanes) * lanes
        flat = jnp.pad(flat, (0, padded_total - total))

    rows = padded_total // lanes
    x2d = flat.reshape(rows, lanes)  # pure collapse of contiguous dims -> free

    # dtype-aware sublane granularity: 8 rows (f32), 16 (bf16/fp16), 32 (int8/fp8).
    sub = max(8, 32 // itemsize)

    tile_bytes, vmem_limit, want_two_steps = _generation_config()
    budget_rows = max(sub, (tile_bytes // (lanes * itemsize)) // sub * sub)

    if rows > budget_rows:
        tile_rows = budget_rows
    elif want_two_steps and rows >= 2 * sub:
        # >= 2 grid steps so "parallel" can split work across both TensorCores.
        tile_rows = ((pl.cdiv(rows, 2) + sub - 1) // sub) * sub
    else:
        tile_rows = rows  # full-dim block is always a legal block shape

    grid = pl.cdiv(rows, tile_rows)  # trailing partial row tile is masked by Pallas

    compiler_kwargs = dict(dimension_semantics=("parallel",))
    if vmem_limit is not None:
        compiler_kwargs["vmem_limit_bytes"] = vmem_limit

    out2d = pl.pallas_call(
        _scale_shift_kernel,
        out_shape=jax.ShapeDtypeStruct((rows, lanes), dtype),
        grid=(grid,),
        in_specs=[
            pl.BlockSpec(memory_space=pltpu.SMEM),               # singleton_weight (1,)
            pl.BlockSpec(memory_space=pltpu.SMEM),               # singleton_bias (1,)
            pl.BlockSpec((tile_rows, lanes), lambda i: (i, 0)),  # activation tile
        ],
        out_specs=pl.BlockSpec((tile_rows, lanes), lambda i: (i, 0)),
        compiler_params=pltpu.CompilerParams(**compiler_kwargs),
        cost_estimate=pl.CostEstimate(
            flops=2 * total,
            transcendentals=0,
            bytes_accessed=2 * total * itemsize,
        ),
    )(w, b, x2d)

    out = out2d.reshape(padded_total)
    if padded_total != total:
        out = out[:total]
    return out.reshape(orig_shape)


if __name__ == "__main__":
    key = jax.random.PRNGKey(0)

    batch, seq, hidden = 2, 8, 32
    hidden_states = jax.random.normal(key, (batch, seq, hidden), dtype=jnp.float32)

    # nn.Parameter(torch.ones(1)) / nn.Parameter(torch.zeros(1)), perturbed
    # deterministically so the affine transform is actually exercised.
    singleton_weight = jnp.ones((1,), dtype=jnp.float32) + 0.25
    singleton_bias = jnp.zeros((1,), dtype=jnp.float32) - 0.5

    out = mctct_layer_norm(hidden_states, singleton_weight, singleton_bias)
    out = jax.block_until_ready(out)

    # Reference (mirrors the PyTorch forward exactly).
    ref = hidden_states * singleton_weight + singleton_bias
    assert out.shape == hidden_states.shape
    assert jnp.allclose(out, ref, atol=1e-6, rtol=1e-6)

    print("KERNEL_OK")
</pallas_src>

<mosaic_0001>
module attributes {stable_mosaic.version = 11 : i64} {
  func.func @_scale_shift_kernel(%arg0: i32, %arg1: memref<1xf32, #tpu.memory_space<smem>>, %arg2: memref<1xf32, #tpu.memory_space<smem>>, %arg3: memref<1x512xf32, #tpu.memory_space<vmem>>, %arg4: memref<1x512xf32, #tpu.memory_space<vmem>>) attributes {dimension_semantics = [#tpu.dimension_semantics<parallel>], iteration_bounds = array<i64: 1>, scalar_prefetch = 0 : i64, scratch_operands = 0 : i64, tpu.core_type = #tpu.core_type<tc>, window_params = [{transform_indices = @transform_0, window_bounds = array<i64: 1>}, {transform_indices = @transform_1, window_bounds = array<i64: 1>}, {transform_indices = @transform_2, window_bounds = array<i64: 1, 512>}, {transform_indices = @transform_3, window_bounds = array<i64: 1, 512>}]} {
    %c0 = arith.constant 0 : index
    %c0_0 = arith.constant 0 : index
    %0 = vector.load %arg3[%c0, %c0_0] : memref<1x512xf32, #tpu.memory_space<vmem>>, vector<1x512xf32>
    %c0_1 = arith.constant 0 : index
    %1 = memref.load %arg1[%c0_1] : memref<1xf32, #tpu.memory_space<smem>>
    %2 = vector.broadcast %1 : f32 to vector<1x512xf32>
    %3 = arith.mulf %0, %2 : vector<1x512xf32>
    %c0_2 = arith.constant 0 : index
    %4 = memref.load %arg2[%c0_2] : memref<1xf32, #tpu.memory_space<smem>>
    %5 = vector.broadcast %4 : f32 to vector<1x512xf32>
    %6 = arith.addf %3, %5 : vector<1x512xf32>
    %c0_3 = arith.constant 0 : index
    %c0_4 = arith.constant 0 : index
    %7 = vector.load %arg4[%c0_3, %c0_4] : memref<1x512xf32, #tpu.memory_space<vmem>>, vector<1x512xf32>
    tpu.vector_store %arg4[%c0_3, %c0_4], %6 {strides = array<i32>} : memref<1x512xf32, #tpu.memory_space<vmem>>, vector<1x512xf32>,
    return
  }
  func.func @transform_0(%arg0: i32) -> i32 {
    %c0_i32 = arith.constant 0 : i32
    %c0_i32_0 = arith.constant 0 : i32
    return %c0_i32 : i32
  }
  func.func @transform_1(%arg0: i32) -> i32 {
    %c0_i32 = arith.constant 0 : i32
    %c0_i32_0 = arith.constant 0 : i32
    return %c0_i32 : i32
  }
  func.func @transform_2(%arg0: i32) -> (i32, i32) {
    %c0_i32 = arith.constant 0 : i32
    %c0_i32_0 = arith.constant 0 : i32
    return %arg0, %c0_i32 : i32, i32
  }
  func.func @transform_3(%arg0: i32) -> (i32, i32) {
    %c0_i32 = arith.constant 0 : i32
    %c0_i32_0 = arith.constant 0 : i32
    return %arg0, %c0_i32 : i32, i32
  }
}

</mosaic_0001>

<bundles_post_ra>
// kernel: tpu_custom_call.1
= control target key start
LH: loop header
LB: loop body
LE: loop exit
PB: predicated region body
PF: predicated region fallthrough
CT: control target
= control target key end

     0   :  { %v24_v3 = vlaneseq  ;;  %s99_s0 = inlined_call_operand.<no memory space> [shape: f32[1], index: 0, kind: input, shape index: {}]   ;;  %s100_s1 = inlined_call_operand.<no memory space> [shape: f32[1], index: 1, kind: input, shape index: {}]   ;;  %s101_s2 = inlined_call_operand.vmem [shape: f32[1,512], index: 2, kind: input, shape index: {}]   ;;  %s102_s3 = inlined_call_operand.hbm [shape: f32[1,512], index: 3, kind: output, shape index: {}]  }
   0x1   :  { %v17_v0 = vld [vmem:[%s101_s2] sm:$0xf]  ;;  %v19_v1 = vstv %s99_s0  ;;  %v22_v2 = vstv %s100_s1 }
   0x2   :  { %10 = vsyncpa [#allocation5], 0  ;;  %v20_v4 = vmul.f32 %v19_v1, %v17_v0  ;;  %s66_s18 = smov [#allocation4]   ;;  %vm26_vm0 = vcmp.lt.s32.totalorder %v24_v3, 512 }
   0x3   :  { %s35_s19 = sshll.u32 %s66_s18, 4  ;;  %s36_s19 = int_to_ptr.vmem [resolvable:$true] %s35_s19 }
   0x4   :  { %v23_v5 = vadd.f32 %v22_v2, %v20_v4  ;;  %s44_s20 = scalar_lea.vmem %s36_s19, 64  ;;  %p49_p1 = scmp.lt.s32.totalorder %s36_s19, %s36_s19 }
   0x5   :  { %p45_p0 = scmp.ne.s32.totalorder %s36_s19, %s44_s20  ;;  %p50_p2 = scmp.lt.s32.totalorder %s44_s20, %s44_s20 }
   0x6   :  { %28 = vst.msk [vmem:[#allocation4] sm:$0xf] %vm26_vm0, %v23_v5 }
   0x7   :  { %p51_p3 = por %p50_p2, %p49_p1 }
   0x9   :  { %p52_p4 = pnand %p51_p3, %p45_p0 }
   0xb   :  { %55 = shalt.err (!%p52_p4)
}
   0xc   :  { %38 = dma.vmem_to_hbm [thread:$0]  %s36_s19, 64, %s102_s3, [#allocation5]  }
   0xd   :  { %64 = dma.done.wait [#allocation5], 64  }
   0xe   :  { %65 = vsyncadd [#allocation5], 4294967232 }
   0xf   :  { %42 = vsyncpa [#allocation5], 1 }

</bundles_post_ra>
